<compile_context>
chip_gen: v7x
topology: tpu7x:2x2x1
jax: 0.10.0
libtpu: 0.0.40
codegen_flags: <defaults>
</compile_context>

<pallas_src>
import functools

import jax
import jax.numpy as jnp
import numpy as np
from jax.experimental import pallas as pl
from jax.experimental.pallas import tpu as pltpu


def _round_up(x, m):
    return ((x + m - 1) // m) * m


def _device_kind():
    try:
        return jax.devices()[0].device_kind.lower()
    except Exception:
        return ""


def _sdh_loss_kernel(logits_ref, u_ref, lbl_ref, out_ref,
                     acc_j1_ref, acc_sq_ref, acc_ce_ref,
                     *, n_total, steps_per_split, tile_n):
    s = pl.program_id(0)          # batch split (maps to a TensorCore on v7x)
    i = pl.program_id(1)          # streaming step within the split
    last = pl.num_programs(1) - 1

    # ---- init per-split accumulators --------------------------------------
    @pl.when(i == 0)
    def _():
        acc_j1_ref[...] = jnp.zeros_like(acc_j1_ref)
        acc_sq_ref[...] = jnp.zeros_like(acc_sq_ref)
        acc_ce_ref[...] = jnp.zeros_like(acc_ce_ref)

    # Row validity uses the UNCLAMPED block index so that the duplicate
    # (clamped) blocks fetched by out-of-range grid steps and the padded tail
    # rows of the last real block are all fully masked out.
    blk = s * steps_per_split + i
    row = blk * tile_n + jax.lax.broadcasted_iota(jnp.int32, (tile_n, 1), 0)
    valid = row < n_total

    # ---- j1 / j2_1: purely element-wise accumulation (no per-step XLU) -----
    # (u - sign(u))^2 = u^2 - 2|u| + (u != 0)
    u = u_ref[...].astype(jnp.float32)                     # (tile_n, nbit)
    usq = u * u
    j1_term = usq - 2.0 * jnp.abs(u) + (u != 0).astype(jnp.float32)
    zero_u = jnp.zeros_like(usq)
    acc_j1_ref[...] += jnp.where(valid, j1_term, zero_u)
    acc_sq_ref[...] += jnp.where(valid, usq, zero_u)

    # ---- j2_2: cross entropy against integer labels ------------------------
    logits = logits_ref[...].astype(jnp.float32)           # (tile_n, C)
    idx = lbl_ref[...]                                     # (tile_n, 1) int32
    m = jnp.max(logits, axis=1, keepdims=True)
    sumexp = jnp.sum(jnp.exp(logits - m), axis=1, keepdims=True)
    col = jax.lax.broadcasted_iota(jnp.int32, logits.shape, 1)
    picked = jnp.sum(jnp.where(col == idx, logits, 0.0), axis=1, keepdims=True)
    per_row_ce = m + jnp.log(sumexp) - picked              # (tile_n, 1)
    acc_ce_ref[...] += jnp.where(valid, per_row_ce, jnp.zeros_like(per_row_ce))

    # ---- finalize: one reduction-to-scalar per component, per split --------
    @pl.when(i == last)
    def _():
        j1_sum = jnp.sum(acc_j1_ref[...])
        sq_sum = jnp.sum(acc_sq_ref[...])
        ce_sum = jnp.sum(acc_ce_ref[...])
        lane = jax.lax.broadcasted_iota(jnp.int32, (1, 8, 128), 2)
        vec = jnp.where(lane == 0, j1_sum,
              jnp.where(lane == 1, sq_sum,
              jnp.where(lane == 2, ce_sum, 0.0)))
        out_ref[...] = vec


def sdh_loss_c(logits, code_logits, labels, weight,
               lmbd0=0.001, lmbd1=1.0, lmbd2=0.001, alpha=1.0,
               onehot=True, tile_n=None, num_splits=None):
    """Pallas implementation of SDHLossC.forward. Returns (loss, losses)."""
    n, c = logits.shape
    nbit = code_logits.shape[1]
    assert weight.shape == (c, nbit), (weight.shape, (c, nbit))

    # One-hot -> indices outside the kernel; only (N,1) int32 indices travel.
    if onehot:
        label_idx = jnp.argmax(labels, axis=1)
    else:
        label_idx = labels
    label_idx = label_idx.astype(jnp.int32).reshape(n, 1)

    # j3 is grid-invariant and tiny relative to the N-streaming work: compute
    # it in plain XLA so no C x C intermediate ever enters the kernel's VMEM
    # budget (and the weight tensor is dropped from the kernel entirely).
    w = weight.astype(jnp.float32)
    ortho = jax.lax.dot_general(w, w, dimension_numbers=(((1,), (1,)), ((), ())),
                                preferred_element_type=jnp.float32)
    d3 = ortho - 1.0
    j3 = jnp.mean(d3 * d3)

    kind = _device_kind()
    is_v7 = "v7" in kind

    # ---- generation-aware tile / split / VMEM sizing ------------------------
    if tile_n is None:
        tile_n = 512 if is_v7 else 1024
    n_cap = max(8, (n // 8) * 8)             # keep tile_n <= n (when n >= 8)
    tile_n = max(8, _round_up(min(int(tile_n), n_cap), 8))

    isz = lambda a: jnp.dtype(a.dtype).itemsize
    vmem_cap = (40 << 20) if is_v7 else (96 << 20)

    def vmem_need(t):
        per_tile = t * (c * isz(logits) + nbit * isz(code_logits) + 4)
        temporaries = t * 4 * (4 * c + 4 * nbit + 8)   # f32/i32 in-kernel temps
        accum = t * 4 * (2 * nbit + 1)                 # VMEM accumulators
        return 2 * per_tile + temporaries + accum + (2 << 20)

    while vmem_need(tile_n) > vmem_cap and tile_n > 8:
        tile_n = max(8, _round_up(tile_n // 2, 8))
    vmem_limit = int(min(max(vmem_need(tile_n), 8 << 20), vmem_cap))

    total_blocks = pl.cdiv(n, tile_n)
    if num_splits is None:
        num_splits = 2 if is_v7 else 1       # v7x: 2 TensorCores per chip
    num_splits = max(1, min(int(num_splits), total_blocks))
    steps_per_split = pl.cdiv(total_blocks, num_splits)

    def block_idx(s, i):
        # Clamp so out-of-range steps re-fetch a valid block (rows are masked
        # in-kernel via the unclamped index).
        return jnp.minimum(s * steps_per_split + i, total_blocks - 1)

    cost = pl.CostEstimate(
        flops=int(n * (6 * c + 8 * nbit)),
        transcendentals=int(n * c + n),
        bytes_accessed=int(n * c * isz(logits) + n * nbit * isz(code_logits)
                           + n * 4 + num_splits * 8 * 128 * 4),
    )

    kernel = functools.partial(_sdh_loss_kernel, n_total=n,
                               steps_per_split=steps_per_split, tile_n=tile_n)

    comps = pl.pallas_call(
        kernel,
        out_shape=jax.ShapeDtypeStruct((num_splits, 8, 128), jnp.float32),
        grid_spec=pltpu.PrefetchScalarGridSpec(
            num_scalar_prefetch=0,
            grid=(num_splits, steps_per_split),
            in_specs=[
                pl.BlockSpec((tile_n, c), lambda s, i: (block_idx(s, i), 0)),
                pl.BlockSpec((tile_n, nbit), lambda s, i: (block_idx(s, i), 0)),
                pl.BlockSpec((tile_n, 1), lambda s, i: (block_idx(s, i), 0)),
            ],
            out_specs=pl.BlockSpec((1, 8, 128), lambda s, i: (s, 0, 0)),
            scratch_shapes=[
                pltpu.VMEM((tile_n, nbit), jnp.float32),   # acc_j1
                pltpu.VMEM((tile_n, nbit), jnp.float32),   # acc_sq (j2_1)
                pltpu.VMEM((tile_n, 1), jnp.float32),      # acc_ce (j2_2)
            ],
        ),
        compiler_params=pltpu.CompilerParams(
            dimension_semantics=("parallel", "arbitrary"),
            vmem_limit_bytes=vmem_limit),
        cost_estimate=cost,
    )(logits, code_logits, label_idx)

    j1_sum = jnp.sum(comps[:, 0, 0])
    sq_sum = jnp.sum(comps[:, 0, 1])
    ce_sum = jnp.sum(comps[:, 0, 2])

    j1 = j1_sum / jnp.float32(n * nbit)
    j2_1 = sq_sum / jnp.float32(nbit)
    j2_2 = ce_sum / jnp.float32(n)
    j2 = j2_1 / 2.0
    loss = lmbd0 * j1 - lmbd1 * j2 + alpha * j2_2 + lmbd2 * j3
    losses = {"j1": j1, "j2_1": j2_1, "j2_2": j2_2, "j3": j3}
    return loss, losses


def _reference(logits, u, labels_onehot, w,
               lmbd0=0.001, lmbd1=1.0, lmbd2=0.001, alpha=1.0):
    # Pure-JAX mirror of the PyTorch module for a sanity check.
    j1 = jnp.mean((u - jnp.sign(u)) ** 2)
    j2_1 = jnp.trace(u.T @ u) / u.shape[1]
    idx = jnp.argmax(labels_onehot, axis=1)
    logp = jax.nn.log_softmax(logits, axis=1)
    j2_2 = -jnp.mean(logp[jnp.arange(logits.shape[0]), idx])
    ortho = w @ w.T
    j3 = jnp.mean((ortho - 1.0) ** 2)
    loss = lmbd0 * j1 - lmbd1 * (j2_1 / 2.0) + alpha * j2_2 + lmbd2 * j3
    return loss, {"j1": j1, "j2_1": j2_1, "j2_2": j2_2, "j3": j3}


if __name__ == "__main__":
    key = jax.random.PRNGKey(0)
    k1, k2, k3, k4 = jax.random.split(key, 4)

    # Small shapes; N=10 with tile_n=8 exercises the multi-step grid,
    # the VMEM accumulators, the padded-tail masking and the 2-split path.
    N, C, NBIT = 10, 16, 32

    logits = jax.random.normal(k1, (N, C), dtype=jnp.float32)
    code_logits = jax.random.normal(k2, (N, NBIT), dtype=jnp.float32)
    label_idx = jax.random.randint(k3, (N,), 0, C)
    labels_onehot = jax.nn.one_hot(label_idx, C, dtype=jnp.float32)
    weight = jax.random.normal(k4, (C, NBIT), dtype=jnp.float32) * 0.1

    ref_loss, ref_losses = _reference(logits, code_logits, labels_onehot, weight)
    ref_loss = jax.block_until_ready(ref_loss)

    configs = [
        dict(),                                # auto tile / auto split
        dict(tile_n=8, num_splits=1),          # multi-step streaming path
        dict(tile_n=8, num_splits=2),          # two-split (per-core) path
    ]
    for cfg in configs:
        loss, losses = sdh_loss_c(logits, code_logits, labels_onehot, weight,
                                  onehot=True, **cfg)
        loss = jax.block_until_ready(loss)
        assert np.allclose(np.asarray(loss), np.asarray(ref_loss),
                           rtol=1e-4, atol=1e-5), (cfg, loss, ref_loss)
        for k in ("j1", "j2_1", "j2_2", "j3"):
            assert np.allclose(np.asarray(losses[k]), np.asarray(ref_losses[k]),
                               rtol=1e-4, atol=1e-5), (cfg, k, losses[k],
                                                       ref_losses[k])

    print("KERNEL_OK")
</pallas_src>

<mosaic_0001>
module attributes {stable_mosaic.version = 11 : i64} {
  func.func @_sdh_loss_kernel(%arg0: i32, %arg1: i32, %arg2: memref<8x16xf32, #tpu.memory_space<vmem>>, %arg3: memref<8x32xf32, #tpu.memory_space<vmem>>, %arg4: memref<8x1xi32, #tpu.memory_space<vmem>>, %arg5: memref<1x8x128xf32, #tpu.memory_space<vmem>>, %arg6: memref<8x32xf32, #tpu.memory_space<vmem>>, %arg7: memref<8x32xf32, #tpu.memory_space<vmem>>, %arg8: memref<8x1xf32, #tpu.memory_space<vmem>>) attributes {dimension_semantics = [#tpu.dimension_semantics<parallel>, #tpu.dimension_semantics<arbitrary>], iteration_bounds = array<i64: 1, 2>, scalar_prefetch = 0 : i64, scratch_operands = 3 : i64, tpu.core_type = #tpu.core_type<tc>, window_params = [{transform_indices = @transform_0, window_bounds = array<i64: 8, 16>}, {transform_indices = @transform_1, window_bounds = array<i64: 8, 32>}, {transform_indices = @transform_2, window_bounds = array<i64: 8, 1>}, {transform_indices = @transform_3, window_bounds = array<i64: 1, 8, 128>}]} {
    %c0_i32 = arith.constant 0 : i32
    %0 = arith.cmpi eq, %arg1, %c0_i32 : i32
    %1 = arith.extui %0 : i1 to i32
    %c0_i32_0 = arith.constant 0 : i32
    %2 = arith.cmpi ne, %1, %c0_i32_0 : i32
    scf.if %2 {
      %cst_26 = arith.constant 0.000000e+00 : f32
      %62 = vector.broadcast %cst_26 : f32 to vector<8x32xf32>
      %c0_27 = arith.constant 0 : index
      %c0_28 = arith.constant 0 : index
      %63 = vector.load %arg6[%c0_27, %c0_28] : memref<8x32xf32, #tpu.memory_space<vmem>>, vector<8x32xf32>
      tpu.vector_store %arg6[%c0_27, %c0_28], %62 {strides = array<i32>} : memref<8x32xf32, #tpu.memory_space<vmem>>, vector<8x32xf32>,
      %cst_29 = arith.constant 0.000000e+00 : f32
      %64 = vector.broadcast %cst_29 : f32 to vector<8x32xf32>
      %c0_30 = arith.constant 0 : index
      %c0_31 = arith.constant 0 : index
      %65 = vector.load %arg7[%c0_30, %c0_31] : memref<8x32xf32, #tpu.memory_space<vmem>>, vector<8x32xf32>
      tpu.vector_store %arg7[%c0_30, %c0_31], %64 {strides = array<i32>} : memref<8x32xf32, #tpu.memory_space<vmem>>, vector<8x32xf32>,
      %cst_32 = arith.constant 0.000000e+00 : f32
      %66 = vector.broadcast %cst_32 : f32 to vector<8x1xf32>
      %c0_33 = arith.constant 0 : index
      %c0_34 = arith.constant 0 : index
      %67 = vector.load %arg8[%c0_33, %c0_34] : memref<8x1xf32, #tpu.memory_space<vmem>>, vector<8x1xf32>
      tpu.vector_store %arg8[%c0_33, %c0_34], %66 {strides = array<i32>} : memref<8x1xf32, #tpu.memory_space<vmem>>, vector<8x1xf32>,
    } else {
    }
    %c2_i32 = arith.constant 2 : i32
    %3 = arith.muli %arg0, %c2_i32 : i32
    %4 = arith.addi %3, %arg1 : i32
    %c8_i32 = arith.constant 8 : i32
    %5 = arith.muli %4, %c8_i32 : i32
    %6 = tpu.iota {dimensions = array<i32: 0>} : vector<8x1xi32>
    %7 = vector.broadcast %5 : i32 to vector<8x1xi32>
    %8 = arith.addi %7, %6 : vector<8x1xi32>
    %c10_i32 = arith.constant 10 : i32
    %9 = vector.broadcast %c10_i32 : i32 to vector<8x1xi32>
    %10 = arith.cmpi slt, %8, %9 : vector<8x1xi32>
    %c0 = arith.constant 0 : index
    %c0_1 = arith.constant 0 : index
    %11 = vector.load %arg3[%c0, %c0_1] : memref<8x32xf32, #tpu.memory_space<vmem>>, vector<8x32xf32>
    %12 = arith.mulf %11, %11 : vector<8x32xf32>
    %13 = math.absf %11 : vector<8x32xf32>
    %cst = arith.constant 2.000000e+00 : f32
    %14 = vector.broadcast %cst : f32 to vector<8x32xf32>
    %15 = arith.mulf %14, %13 : vector<8x32xf32>
    %16 = arith.subf %12, %15 : vector<8x32xf32>
    %cst_2 = arith.constant 0.000000e+00 : f32
    %17 = vector.broadcast %cst_2 : f32 to vector<8x32xf32>
    %18 = arith.cmpf one, %11, %17 : vector<8x32xf32>
    %19 = arith.extui %18 : vector<8x32xi1> to vector<8x32xi32>
    %20 = arith.sitofp %19 : vector<8x32xi32> to vector<8x32xf32>
    %21 = arith.addf %16, %20 : vector<8x32xf32>
    %cst_3 = arith.constant 0.000000e+00 : f32
    %22 = vector.broadcast %cst_3 : f32 to vector<8x32xf32>
    %c0_4 = arith.constant 0 : index
    %c0_5 = arith.constant 0 : index
    %23 = vector.load %arg6[%c0_4, %c0_5] : memref<8x32xf32, #tpu.memory_space<vmem>>, vector<8x32xf32>
    %24 = vector.shape_cast %10 : vector<8x1xi1> to vector<8x1xi1>
    %25 = vector.broadcast %24 : vector<8x1xi1> to vector<8x32xi1>
    %26 = arith.select %25, %21, %22 : vector<8x32xi1>, vector<8x32xf32>
    %27 = arith.addf %23, %26 : vector<8x32xf32>
    %c0_6 = arith.constant 0 : index
    %c0_7 = arith.constant 0 : index
    %28 = vector.load %arg6[%c0_6, %c0_7] : memref<8x32xf32, #tpu.memory_space<vmem>>, vector<8x32xf32>
    tpu.vector_store %arg6[%c0_6, %c0_7], %27 {strides = array<i32>} : memref<8x32xf32, #tpu.memory_space<vmem>>, vector<8x32xf32>,
    %c0_8 = arith.constant 0 : index
    %c0_9 = arith.constant 0 : index
    %29 = vector.load %arg7[%c0_8, %c0_9] : memref<8x32xf32, #tpu.memory_space<vmem>>, vector<8x32xf32>
    %30 = vector.shape_cast %10 : vector<8x1xi1> to vector<8x1xi1>
    %31 = vector.broadcast %30 : vector<8x1xi1> to vector<8x32xi1>
    %32 = arith.select %31, %12, %22 : vector<8x32xi1>, vector<8x32xf32>
    %33 = arith.addf %29, %32 : vector<8x32xf32>
    %c0_10 = arith.constant 0 : index
    %c0_11 = arith.constant 0 : index
    %34 = vector.load %arg7[%c0_10, %c0_11] : memref<8x32xf32, #tpu.memory_space<vmem>>, vector<8x32xf32>
    tpu.vector_store %arg7[%c0_10, %c0_11], %33 {strides = array<i32>} : memref<8x32xf32, #tpu.memory_space<vmem>>, vector<8x32xf32>,
    %c0_12 = arith.constant 0 : index
    %c0_13 = arith.constant 0 : index
    %35 = vector.load %arg2[%c0_12, %c0_13] : memref<8x16xf32, #tpu.memory_space<vmem>>, vector<8x16xf32>
    %c0_14 = arith.constant 0 : index
    %c0_15 = arith.constant 0 : index
    %36 = vector.load %arg4[%c0_14, %c0_15] : memref<8x1xi32, #tpu.memory_space<vmem>>, vector<8x1xi32>
    %cst_16 = arith.constant dense<0xFF800000> : vector<8xf32>
    %37 = vector.multi_reduction <maximumf>, %35, %cst_16 [1] : vector<8x16xf32> to vector<8xf32>
    %38 = vector.shape_cast %37 : vector<8xf32> to vector<8x1xf32>
    %39 = vector.broadcast %38 : vector<8x1xf32> to vector<8x16xf32>
    %40 = arith.subf %35, %39 : vector<8x16xf32>
    %41 = math.exp %40 : vector<8x16xf32>
    %cst_17 = arith.constant dense<0.000000e+00> : vector<8xf32>
    %42 = vector.multi_reduction <add>, %41, %cst_17 [1] : vector<8x16xf32> to vector<8xf32>
    %43 = vector.shape_cast %42 : vector<8xf32> to vector<8x1xf32>
    %44 = tpu.iota {dimensions = array<i32: 1>} : vector<8x16xi32>
    %45 = vector.broadcast %36 : vector<8x1xi32> to vector<8x16xi32>
    %46 = arith.cmpi eq, %44, %45 : vector<8x16xi32>
    %cst_18 = arith.constant 0.000000e+00 : f32
    %47 = vector.broadcast %cst_18 : f32 to vector<8x16xf32>
    %48 = arith.select %46, %35, %47 : vector<8x16xi1>, vector<8x16xf32>
    %cst_19 = arith.constant dense<0.000000e+00> : vector<8xf32>
    %49 = vector.multi_reduction <add>, %48, %cst_19 [1] : vector<8x16xf32> to vector<8xf32>
    %50 = vector.shape_cast %49 : vector<8xf32> to vector<8x1xf32>
    %51 = math.log %43 : vector<8x1xf32>
    %52 = arith.addf %38, %51 : vector<8x1xf32>
    %53 = arith.subf %52, %50 : vector<8x1xf32>
    %c0_20 = arith.constant 0 : index
    %c0_21 = arith.constant 0 : index
    %54 = vector.load %arg8[%c0_20, %c0_21] : memref<8x1xf32, #tpu.memory_space<vmem>>, vector<8x1xf32>
    %cst_22 = arith.constant 0.000000e+00 : f32
    %55 = vector.broadcast %cst_22 : f32 to vector<8x1xf32>
    %56 = arith.select %10, %53, %55 : vector<8x1xi1>, vector<8x1xf32>
    %57 = arith.addf %54, %56 : vector<8x1xf32>
    %c0_23 = arith.constant 0 : index
    %c0_24 = arith.constant 0 : index
    %58 = vector.load %arg8[%c0_23, %c0_24] : memref<8x1xf32, #tpu.memory_space<vmem>>, vector<8x1xf32>
    tpu.vector_store %arg8[%c0_23, %c0_24], %57 {strides = array<i32>} : memref<8x1xf32, #tpu.memory_space<vmem>>, vector<8x1xf32>,
    %c1_i32 = arith.constant 1 : i32
    %59 = arith.cmpi eq, %arg1, %c1_i32 : i32
    %60 = arith.extui %59 : i1 to i32
    %c0_i32_25 = arith.constant 0 : i32
    %61 = arith.cmpi ne, %60, %c0_i32_25 : i32
    scf.if %61 {
      %c0_26 = arith.constant 0 : index
      %c0_27 = arith.constant 0 : index
      %62 = vector.load %arg6[%c0_26, %c0_27] : memref<8x32xf32, #tpu.memory_space<vmem>>, vector<8x32xf32>
      %63 = vector.shape_cast %62 : vector<8x32xf32> to vector<1x8x32xf32>
      %cst_28 = arith.constant dense<0.000000e+00> : vector<1xf32>
      %64 = vector.multi_reduction <add>, %63, %cst_28 [1, 2] : vector<1x8x32xf32> to vector<1xf32>
      %65 = vector.shape_cast %64 : vector<1xf32> to vector<1x1x1xf32>
      %66 = vector.extract %65[0, 0, 0] : f32 from vector<1x1x1xf32>
      %c0_29 = arith.constant 0 : index
      %c0_30 = arith.constant 0 : index
      %67 = vector.load %arg7[%c0_29, %c0_30] : memref<8x32xf32, #tpu.memory_space<vmem>>, vector<8x32xf32>
      %68 = vector.shape_cast %67 : vector<8x32xf32> to vector<1x8x32xf32>
      %cst_31 = arith.constant dense<0.000000e+00> : vector<1xf32>
      %69 = vector.multi_reduction <add>, %68, %cst_31 [1, 2] : vector<1x8x32xf32> to vector<1xf32>
      %70 = vector.shape_cast %69 : vector<1xf32> to vector<1x1x1xf32>
      %71 = vector.extract %70[0, 0, 0] : f32 from vector<1x1x1xf32>
      %c0_32 = arith.constant 0 : index
      %c0_33 = arith.constant 0 : index
      %72 = vector.load %arg8[%c0_32, %c0_33] : memref<8x1xf32, #tpu.memory_space<vmem>>, vector<8x1xf32>
      %73 = vector.shape_cast %72 : vector<8x1xf32> to vector<1x8x1xf32>
      %cst_34 = arith.constant dense<0.000000e+00> : vector<1xf32>
      %74 = vector.multi_reduction <add>, %73, %cst_34 [1, 2] : vector<1x8x1xf32> to vector<1xf32>
      %75 = vector.shape_cast %74 : vector<1xf32> to vector<1x1x1xf32>
      %76 = vector.extract %75[0, 0, 0] : f32 from vector<1x1x1xf32>
      %77 = tpu.iota {dimensions = array<i32: 2>} : vector<1x8x128xi32>
      %c0_i32_35 = arith.constant 0 : i32
      %78 = vector.broadcast %c0_i32_35 : i32 to vector<1x8x128xi32>
      %79 = arith.cmpi eq, %77, %78 : vector<1x8x128xi32>
      %c1_i32_36 = arith.constant 1 : i32
      %80 = vector.broadcast %c1_i32_36 : i32 to vector<1x8x128xi32>
      %81 = arith.cmpi eq, %77, %80 : vector<1x8x128xi32>
      %c2_i32_37 = arith.constant 2 : i32
      %82 = vector.broadcast %c2_i32_37 : i32 to vector<1x8x128xi32>
      %83 = arith.cmpi eq, %77, %82 : vector<1x8x128xi32>
      %cst_38 = arith.constant 0.000000e+00 : f32
      %84 = vector.broadcast %76 : f32 to vector<1x8x128xf32>
      %85 = vector.broadcast %cst_38 : f32 to vector<1x8x128xf32>
      %86 = arith.select %83, %84, %85 : vector<1x8x128xi1>, vector<1x8x128xf32>
      %87 = vector.broadcast %71 : f32 to vector<1x8x128xf32>
      %88 = arith.select %81, %87, %86 : vector<1x8x128xi1>, vector<1x8x128xf32>
      %89 = vector.broadcast %66 : f32 to vector<1x8x128xf32>
      %90 = arith.select %79, %89, %88 : vector<1x8x128xi1>, vector<1x8x128xf32>
      %c0_39 = arith.constant 0 : index
      %c0_40 = arith.constant 0 : index
      %c0_41 = arith.constant 0 : index
      %91 = vector.load %arg5[%c0_39, %c0_40, %c0_41] : memref<1x8x128xf32, #tpu.memory_space<vmem>>, vector<1x8x128xf32>
      tpu.vector_store %arg5[%c0_39, %c0_40, %c0_41], %90 {strides = array<i32>} : memref<1x8x128xf32, #tpu.memory_space<vmem>>, vector<1x8x128xf32>,
    } else {
    }
    return
  }
  func.func @transform_0(%arg0: i32, %arg1: i32) -> (i32, i32) {
    %c2_i32 = arith.constant 2 : i32
    %0 = arith.muli %arg0, %c2_i32 : i32
    %1 = arith.addi %0, %arg1 : i32
    %c1_i32 = arith.constant 1 : i32
    %2 = arith.minsi %1, %c1_i32 : i32
    %c0_i32 = arith.constant 0 : i32
    %c0_i32_0 = arith.constant 0 : i32
    return %2, %c0_i32 : i32, i32
  }
  func.func @transform_1(%arg0: i32, %arg1: i32) -> (i32, i32) {
    %c2_i32 = arith.constant 2 : i32
    %0 = arith.muli %arg0, %c2_i32 : i32
    %1 = arith.addi %0, %arg1 : i32
    %c1_i32 = arith.constant 1 : i32
    %2 = arith.minsi %1, %c1_i32 : i32
    %c0_i32 = arith.constant 0 : i32
    %c0_i32_0 = arith.constant 0 : i32
    return %2, %c0_i32 : i32, i32
  }
  func.func @transform_2(%arg0: i32, %arg1: i32) -> (i32, i32) {
    %c2_i32 = arith.constant 2 : i32
    %0 = arith.muli %arg0, %c2_i32 : i32
    %1 = arith.addi %0, %arg1 : i32
    %c1_i32 = arith.constant 1 : i32
    %2 = arith.minsi %1, %c1_i32 : i32
    %c0_i32 = arith.constant 0 : i32
    %c0_i32_0 = arith.constant 0 : i32
    return %2, %c0_i32 : i32, i32
  }
  func.func @transform_3(%arg0: i32, %arg1: i32) -> (i32, i32, i32) {
    %c0_i32 = arith.constant 0 : i32
    %c0_i32_0 = arith.constant 0 : i32
    %c0_i32_1 = arith.constant 0 : i32
    return %arg0, %c0_i32, %c0_i32_0 : i32, i32, i32
  }
}

</mosaic_0001>

<bundles_post_ra>
// kernel: tpu_custom_call.1
= control target key start
LH: loop header
LB: loop body
LE: loop exit
PB: predicated region body
PF: predicated region fallthrough
CT: control target
= control target key end

     0   :  { %8 = vsyncpa [#allocation6], 0  ;;  %s919_s0 = inlined_call_operand.vmem [shape: f32[10,16], index: 0, kind: input, shape index: {}]   ;;  %s920_s1 = inlined_call_operand.hbm [shape: f32[10,32], index: 1, kind: input, shape index: {}]   ;;  %s921_s2 = inlined_call_operand.vmem [shape: s32[10,1], index: 2, kind: input, shape index: {}]   ;;  %s922_s3 = inlined_call_operand.hbm [shape: f32[1,8,128], index: 3, kind: output, shape index: {}]  }
   0x1   :  { %10 = vsyncpa [#allocation6 + $0x1], 0 }
   0x2   :  { %11 = vsyncpa [#allocation7], 0  ;;  %s742_s12 = smov 0   ;;  %s744_s13 = smov 0  }
   0x3   :  { %s746_s14 = smov 0   ;;  %s748_s15 = smov 0  }
   0x4   :  { %s750_s16 = smov 0   ;;  %s752_s17 = smov 0  }
   0x5 LB: > { %s506_s18 = sadd.s32 4294967295, %s715_s17   ;;  %s26_s19 = sadd.s32 1, %s711_s16  ;;  %s715_s17 = sphi %s752_s17, %s17_s17   ;;  %s711_s16 = sphi %s750_s16, %s932_s16   ;;  %s707_s15 = sphi %s748_s15, %s931_s15   ;;  %s703_s14 = sphi %s746_s14, %s930_s14   ;;  %s699_s13 = sphi %s744_s13, %s929_s13   ;;  %s695_s12 = sphi %s742_s12, %s928_s12  }
   0x6   : > { %p27_p0 = scmp.ge.s32.totalorder %s26_s19, 2  ;;  %p69_p1 = scmp.lt.s32.totalorder %s711_s16, 1 }
   0x7   : > { %s78_s20 = sadd.s32 1, %s703_s14  ;;  %p85_p2 = scmp.ne.s32.totalorder %s703_s14, %s699_s13 }
   0x8   : > { %s934_s19 = smov (%p27_p0, %s26_s19), 0  ;;  %p86_p4 = scmp.eq.s32.totalorder %s715_s17, 0 }
   0x9   : > { %s70_s21 = scalar_select %p69_p1, %s711_s16, 1 }
   0xa   : > { %p73_p3 = scmp.lt.s32.totalorder %s934_s19, 1  ;;  %p91_p5 = scmp.ne.s32.totalorder %s699_s13, %s695_s12 }
   0xb   : > { %p92_p6 = scmp.eq.s32.totalorder %s506_s18, 0  ;;  %p87_p7 = por %p86_p4, %p85_p2 }
   0xc   : > { %s74_s22 = scalar_select %p73_p3, %s934_s19, 1 }
   0xd   : > { %p785_p8 = por %p92_p6, %p91_p5  ;;  %p545_p10 = scmp.lt.s32.totalorder %s715_s17, 2 }
   0xe   : > { %s75_s24 = ssub.s32 %s70_s21, %s74_s22  ;;  %s190_s25 = sand.u32 1, %s703_s14  }
   0xf   : > { %p76_p9 = scmp.eq.s32.totalorder %s75_s24, 0  ;;  %s510_s26 = sshll.u32 %s70_s21, 7 }
  0x10   : > { %s509_s28 = sshll.u32 %s190_s25, 3  ;;  %s797_s4 = scalar_lea.hbm %s920_s1, %s510_s26 }
  0x11   : > { %s792_s27 = scalar_select %p76_p9, %s703_s14, %s78_s20  }
  0x12   : > { %s194_s5 = scalar_lea.vmem [#allocation5], %s509_s28  ;;  %p799_p11 = pnand %p545_p10, %p87_p7 }
  0x13   : > { %s205_s6 = sshll.u32 %s194_s5, 4  ;;  %s191_s8 = scalar_lea.sflag [#allocation6], %s190_s25  ;;  %s803_s6 = int_to_ptr.vmem [resolvable:$true] %s205_s6 }
  0x14   : > { %s605_s9 = scalar_lea.hbm %s797_s4, 128  ;;  %p607_p1 = pneg %p799_p11 }
  0x15   : > { %p606_p0 = scmp.ne.s32.totalorder %s797_s4, %s605_s9  ;;  %s610_s12 = scalar_lea.hbm %s920_s1, 256 }
  0x16   : > { %p611_p4 = scmp.lt.u32.totalorder %s797_s4, %s920_s1  ;;  %p612_p5 = scmp.lt.u32.totalorder %s610_s12, %s605_s9 }
  0x17   : > { %p608_p2 = pnand %p607_p1, %p606_p0  ;;  %p614_p7 = scmp.lt.u32.totalorder %s605_s9, %s797_s4 }
  0x18   : > { %p613_p6 = por %p612_p5, %p611_p4 }
  0x19   : > { %p609_p3 = pneg %p608_p2 }
  0x1a   : > { %p615_p9 = por %p614_p7, %p613_p6 }
  0x1c   : > { %p616_p10 = pnand %p615_p9, %p609_p3 }
  0x1e   : > { %619 = shalt.err (!%p616_p10)
}
  0x1f   : > { %s620_s22 = scalar_lea.vmem %s803_s6, 128  ;;  %s717_s24 = smov [#allocation5]  }
  0x20   : > { %p621_p0 = scmp.ne.s32.totalorder %s803_s6, %s620_s22  ;;  %s625_s25 = sshll.u32 %s717_s24, 4  ;;  %s626_s25 = int_to_ptr.vmem [resolvable:$false] %s625_s25 }
  0x21   : > { %s627_s26 = scalar_lea.vmem %s626_s25, 256  ;;  %p628_p13 = scmp.lt.s32.totalorder %s803_s6, %s626_s25 }
  0x22   : > { %p623_p2 = pnand %p621_p0, %p607_p1  ;;  %p629_p4 = scmp.lt.s32.totalorder %s627_s26, %s620_s22 }
  0x24   : > { %p624_p12 = pneg %p623_p2  ;;  %p630_p5 = por %p629_p4, %p628_p13 }
  0x26   : > { %p631_p6 = pnand %p630_p5, %p624_p12 }
  0x28   : > { %634 = shalt.err (!%p631_p6)
}
  0x29   : > { %544 = dma.hbm_to_vmem [thread:$0]  (!%p799_p11), %s797_s4, 128, %s803_s6, %s191_s8  }
  0x2a   : > { %p925_p3 = scmp.lt.s32.totalorder %s715_s17, 3  ;;  %p926_p7 = scmp.ge.s32.totalorder %s715_s17, 1 }
  0x2c   : > { %p226_p1 = pnand %p926_p7, %p925_p3 }
  0x2d   : > { %s231_s28 = sand.u32 (!%p226_p1), 1, %s699_s13  }
  0x2e   : > { %229 = sbr.rel (%p226_p1) target bundleno = 629 (0x275), region = 32  ;;  %s837_s29 = sshll.u32 (!%p226_p1), %s231_s28, 3 }
  0x2f   : > { %s232_s30 = scalar_lea.sflag (!%p226_p1), [#allocation6], %s231_s28  ;;  %s235_s5 = scalar_lea.vmem (!%p226_p1), [#allocation5], %s837_s29 }
  0x35   : > { %686 = dma.done.wait (%p785_p8), %s232_s30, 128  }
  0x36   : > { %688 = vsyncadd (%p785_p8), %s232_s30, 4294967168  ;;  %p271_p11 = scmp.lt.s32.totalorder %s707_s15, 1  ;;  %p521_p12 = scmp.ne.s32.totalorder %s707_s15, 0 }
  0x37   : > { %vm301_vm0 = vcmask (!%p521_p12), 261120   ;;  %vm304_vm1 = vcmask (!%p521_p12), 7168   ;;  %v718_v0 = vmov (!%p521_p12), 0.0  }
  0x38   : > { %s272_s4 = scalar_select %p271_p11, %s707_s15, 1 }
  0x39   : > { %300 = sbr.rel (%p521_p12) target bundleno = 64 (0x40), region = 40  ;;  %302 = vst.msk [vmem:[#allocation2] sm:$0xff] (!%p521_p12), %vm301_vm0, %v718_v0  ;;  %303 = vst.msk [vmem:[#allocation3] sm:$0xff] (!%p521_p12), %vm301_vm0, %v718_v0 }
  0x3a   : > { %s936_s4 = smov (!%p271_p11, %s272_s4), 1  ;;  %305 = vst.msk [vmem:[#allocation4] sm:$0xff] (!%p521_p12), %vm304_vm1, %v718_v0 }
  0x3b   : > { %s516_s6 = sshll.u32 %s936_s4, 3 }
  0x3c   : > { %s276_s9 = scalar_lea.vmem %s919_s0, %s516_s6  ;;  %s292_s12 = scalar_lea.vmem %s921_s2, %s516_s6 }
  0x40 PF: > { %v334_v1 = vld [vmem:[%s276_s9] sm:$0xff]  ;;  %vm336_vm2 = vcmask 130048   ;;  %v719_v3 = vmov 0   ;;  %v309_v8 = vlaneseq  ;;  %v720_v20 = vmov 0.0   ;;  %s522_s23 = sshll.u32 %s707_s15, 3  ;;  %v330_v27 = vld [vmem:[#allocation3] sm:$0xff] }
  0x41   : > { %v337_v2 = vsel %vm336_vm2, %v334_v1, -inf  ;;  %600 = vset.pattern.permute.xlu0 %v719_v3  ;;  %v335_v4 = vld [vmem:[%s292_s12] sm:$0xff]  ;;  %v311_v23 = vstv %s522_s23  ;;  %vm328_vm6 = vcmask 261120   ;;  %v360_v37 = vld [vmem:[#allocation4] sm:$0xff]  ;;  %vm363_vm7 = vcmask 7168   ;;  %p524_p8 = scmp.ne.s32.totalorder %s707_s15, 1 }
  0x42   : > { %338 = vmax.xlane.f32.xlu0 %v337_v2  ;;  %v854_v9 = vand.u32 127, %v309_v8  ;;  %v314_v15 = vld [vmem:[%s235_s5] sm:$0xff]  ;;  %v310_v17 = vshrl.u32 %v309_v8, 7 }
  0x43   : > { %v316_v16 = vand.u32 2147483647, %v314_v15  ;;  %v315_v18 = vmul.f32 %v314_v15, %v314_v15  ;;  %vm319_vm4 = vcmp.ne.f32.partialorder %v314_v15, 0.0  ;;  %v323_v26 = vld [vmem:[#allocation2] sm:$0xff] }
  0x44   : > { %v523_v21 = vsel %vm319_vm4, 1.0, %v720_v20  ;;  %v312_v24 = vadd.s32 %v311_v23, %v310_v17  ;;  %vm404_vm8 = vcmp.eq.s32.totalorder (!%p524_p8), %v854_v9, 2  ;;  %vm403_vm9 = vcmp.eq.s32.totalorder (!%p524_p8), %v854_v9, 1 }
  0x45   : > { %v317_v19 = vmul.f32 2.0, %v316_v16  ;;  %vm402_vm10 = vcmp.eq.s32.totalorder (!%p524_p8), %v854_v9, 0 }
  0x46   : > { %vm313_vm5 = vcmp.lt.s32.totalorder %v312_v24, 10 }
  0x47   : > { %v318_v22 = vsub.f32 %v315_v18, %v317_v19  ;;  %v331_v29 = vsel %vm313_vm5, %v315_v18, 0.0 }
  0x48   : > { %v332_v31 = vadd.f32 %v331_v29, %v330_v27 }
  0x49   : > { %v322_v25 = vadd.f32 %v523_v21, %v318_v22 }
  0x4a   : > { %333 = vst.msk [vmem:[#allocation3] sm:$0xff] %vm328_vm6, %v332_v31 }
  0x4b   : > { %v326_v28 = vsel %vm313_vm5, %v322_v25, 0.0 }
  0x4c   : > { %v327_v30 = vadd.f32 %v326_v28, %v323_v26 }
  0x4e   : > { %329 = vst.msk [vmem:[#allocation2] sm:$0xff] %vm328_vm6, %v327_v30 }
  0x51   : > { %v380_v43 = vld [vmem:[#allocation3] sm:$0xff] (!%p524_p8) }
  0x52   : > { %v381_v46 = vsel (!%p524_p8), %vm328_vm6, %v380_v43, 0.0 }
  0x55   : > { %v369_v42 = vld [vmem:[#allocation2] sm:$0xff] (!%p524_p8) }
  0x56   : > { %v370_v45 = vsel (!%p524_p8), %vm328_vm6, %v369_v42, 0.0 }
  0x58   : > { %349 = vperm.xlu0 %600, %v335_v4  }
  0x77   : > { %371 = vadd.xlane.f32.xlu0 (!%p524_p8), %v370_v45 }
  0x7b   : > { %382 = vadd.xlane.f32.xlu0 (!%p524_p8), %v381_v46 }
  0xcf   : > { %v339_v5 = vpop.xlane.xlu0 %338 }
  0xd0   : > { %v340_v6 = vsub.f32 %v334_v1, %v339_v5 }
  0xd2   : > { %v341_v7 = vmul.f32 1.442695, %v340_v6 }
  0xd4   : > { %601 = vpow2.f32 %v341_v7 }
  0xd7   : > { %v350_v10 = vpop.permute.xlu0 %349 }
  0xd8   : > { %vm351_vm3 = vcmp.eq.s32.totalorder %v854_v9, %v350_v10 }
  0xd9   : > { %v352_v12 = vsel %vm351_vm3, %v334_v1, 0.0 }
  0xda   : > { %v353_v14 = vsel %vm336_vm2, %v352_v12, 0.0 }
  0xde   : > { %v602_v11 = vpop.eup %601 }
  0xdf   : > { %v343_v13 = vsel %vm336_vm2, %v602_v11, 0.0 }
  0xe0   : > { %344 = vadd.xlane.f32.xlu1 %v343_v13 }
  0xe4   : > { %354 = vadd.xlane.f32.xlu1 %v353_v14 }
 0x104   : > { %v372_v48 = vpop.xlane.xlu0 (!%p524_p8), %371 }
 0x105   : > { %v373_v50 = vrot.slane (!%p524_p8), %v372_v48, 4 }
 0x107   : > { %v374_v52 = vadd.f32 (!%p524_p8), %v373_v50, %v372_v48 }
 0x108   : > { %v383_v53 = vpop.xlane.xlu0 (!%p524_p8), %382 }
 0x109   : > { %v375_v55 = vrot.slane (!%p524_p8), %v374_v52, 2  ;;  %v384_v56 = vrot.slane (!%p524_p8), %v383_v53, 4 }
 0x10b   : > { %v385_v57 = vadd.f32 (!%p524_p8), %v384_v56, %v383_v53  ;;  %v376_v58 = vadd.f32 (!%p524_p8), %v375_v55, %v374_v52 }
 0x10d   : > { %v386_v60 = vrot.slane (!%p524_p8), %v385_v57, 2  ;;  %v377_v61 = vrot.slane (!%p524_p8), %v376_v58, 1 }
 0x10f   : > { %v387_v62 = vadd.f32 (!%p524_p8), %v386_v60, %v385_v57  ;;  %v378_v63 = vadd.f32 (!%p524_p8), %v377_v61, %v376_v58 }
 0x111   : > { %529 = vpush (!%p524_p8), %v378_v63  ;;  %v388_v1 = vrot.slane (!%p524_p8), %v387_v62, 1 }
 0x113   : > { %v389_v2 = vadd.f32 (!%p524_p8), %v388_v1, %v387_v62 }
 0x115   : > { %531 = vpush (!%p524_p8), %v389_v2 }
 0x142   : > { %s530_s15 = spop (!%p524_p8), %529 }
 0x143   : > { %v409_v7 = vstv (!%p524_p8), %s530_s15 }
 0x146   : > { %s532_s20 = spop (!%p524_p8), %531 }
 0x147   : > { %v407_v4 = vstv (!%p524_p8), %s532_s20 }
 0x16d   : > { %v345_v32 = vpop.xlane.xlu1 %344 }
 0x16e   : > { %603 = vlog2.f32 %v345_v32 }
 0x171   : > { %v355_v35 = vpop.xlane.xlu1 %354 }
 0x178   : > { %v604_v33 = vpop.eup %603 }
 0x179   : > { %v357_v34 = vmul.f32 0.6931472, %v604_v33 }
 0x17b   : > { %v358_v36 = vadd.f32 %v357_v34, %v339_v5 }
 0x17c   : > { %368 = sbr.rel (%p524_p8) target bundleno = 604 (0x25c), region = 44 }
 0x17d   : > { %v359_v38 = vsub.f32 %v358_v36, %v355_v35 }
 0x17f   : > { %v361_v39 = vsel %vm313_vm5, %v359_v38, 0.0 }
 0x180   : > { %v362_v40 = vadd.f32 %v361_v39, %v360_v37 }
 0x182   : > { %364 = vst.msk [vmem:[#allocation4] sm:$0xff] %vm363_vm7, %v362_v40 }
 0x189   : > { %v391_v41 = vld [vmem:[#allocation4] sm:$0xff] }
 0x18a   : > { %v392_v44 = vsel %vm363_vm7, %v391_v41, 0.0 }
 0x18b   : > { %393 = vadd.xlane.f32.xlu1 %v392_v44 }
 0x218   : > { %v394_v47 = vpop.xlane.xlu1 %393 }
 0x219   : > { %v395_v49 = vrot.slane %v394_v47, 4 }
 0x21b   : > { %v396_v51 = vadd.f32 %v395_v49, %v394_v47 }
 0x21d   : > { %v397_v54 = vrot.slane %v396_v51, 2 }
 0x21f   : > { %v398_v59 = vadd.f32 %v397_v54, %v396_v51 }
 0x221   : > { %v399_v0 = vrot.slane %v398_v59, 1 }
 0x223   : > { %v400_v3 = vadd.f32 %v399_v0, %v398_v59 }
 0x225   : > { %533 = vpush %v400_v3 }
 0x256   : > { %s534_s21 = spop %533 }
 0x257   : > { %v405_v5 = vstv %s534_s21 }
 0x258   : > { %v406_v6 = vsel %vm404_vm8, %v405_v5, 0.0 }
 0x259   : > { %v408_v8 = vsel %vm403_vm9, %v407_v4, %v406_v6 }
 0x25a   : > { %v410_v10 = vsel %vm402_vm10, %v409_v7, %v408_v8 }
 0x25b   : > { %411 = vst [vmem:[#allocation8] sm:$0xff] %v410_v10 }
 0x25c PF: > { %p875_p13 = scmp.eq.s32.totalorder %s506_s18, 1  ;;  %s721_s24 = smov [#allocation8]  }
 0x25d   : > { %s421_s25 = sshll.u32 %s721_s24, 4  ;;  %s422_s25 = int_to_ptr.vmem [resolvable:$true] %s421_s25 }
 0x25e   : > { %s635_s26 = scalar_lea.vmem %s422_s25, 128  ;;  %p642_p2 = scmp.lt.s32.totalorder %s422_s25, %s422_s25 }
 0x25f   : > { %p636_p9 = scmp.ne.s32.totalorder %s422_s25, %s635_s26  ;;  %p643_p4 = scmp.lt.s32.totalorder %s635_s26, %s635_s26 }
 0x261   : > { %p637_p10 = pnand %p636_p9, %p875_p13  ;;  %p644_p5 = por %p643_p4, %p642_p2 }
 0x263   : > { %p638_p0 = pneg %p637_p10 }
 0x265   : > { %p645_p6 = pnand %p644_p5, %p638_p0 }
 0x267   : > { %648 = shalt.err (!%p645_p6)
}
 0x268   : > { %s649_s18 = scalar_lea.hbm %s922_s3, 128 }
 0x269   : > { %p650_p3 = scmp.ne.s32.totalorder %s922_s3, %s649_s18  ;;  %p655_p11 = scmp.lt.u32.totalorder %s649_s18, %s922_s3 }
 0x26b   : > { %p651_p7 = pnand %p650_p3, %p875_p13 }
 0x26d   : > { %p652_p1 = pneg %p651_p7 }
 0x26f   : > { %p657_p12 = pnand %p655_p11, %p652_p1 }
 0x271   : > { %660 = shalt.err (!%p657_p12)
}
 0x272   : > { %538 = dma.vmem_to_hbm [thread:$0]  (%p875_p13), %s422_s25, 128, %s922_s3, [#allocation7]  }
 0x273   : > { %690 = dma.done.wait (%p875_p13), [#allocation7], 128  }
 0x274   : > { %692 = vsyncadd (%p875_p13), [#allocation7], 4294967168 }
 0x275 PF: > { %s17_s17 = sadd.s32 1, %s715_s17   ;;  %s928_s12 = smov %s699_s13 }
 0x276   : > { %p14_p8 = scmp.ge.s32.totalorder %s17_s17, 4   ;;  %s929_s13 = smov %s703_s14 }
 0x277   : > { %s930_s14 = smov %s792_s27  ;;  %s931_s15 = smov %s711_s16 }
 0x278   : > { %s932_s16 = smov %s934_s19  ;;  %16 = sbr.rel (!%p14_p8) target bundleno = 5 (0x5), region = 84 }
 0x27f   :  { %434 = vsyncpa [#allocation6], 1 }
 0x280   :  { %436 = vsyncpa [#allocation6 + $0x1], 1 }
 0x281   :  { %437 = vsyncpa [#allocation7], 1 }
 0x282   :  { %439 = vsyncpa [#allocation7 + $0x1], 1 }

</bundles_post_ra>
